<compile_context>
chip_gen: v7x
topology: tpu7x:2x2x1
jax: 0.10.0
libtpu: 0.0.40
codegen_flags: <defaults>
</compile_context>

<pallas_src>
import jax
import jax.numpy as jnp
from jax.experimental import pallas as pl
from jax.experimental.pallas import tpu as pltpu


def _dtype_min(dtype):
    """Identity element for max in `dtype`."""
    if jnp.issubdtype(dtype, jnp.floating):
        return -jnp.inf
    return jnp.iinfo(dtype).min


def _make_max_pool_kernel(ts, seq_len, needs_seq_mask, dtype):
    neutral = _dtype_min(dtype)
    rem = seq_len % ts  # static remainder; > 0 iff needs_seq_mask

    def kernel(x_ref, o_ref):
        # x_ref: (TB, TS, TH) VMEM tile; o_ref: (TB, TH) resident accumulator.
        s = pl.program_id(2)

        @pl.when(s == 0)
        def _init():
            o_ref[...] = jnp.full(o_ref.shape, neutral, dtype=o_ref.dtype)

        def combine(x):
            tile_max = jnp.max(x, axis=1)                    # XLU sublane reduce
            o_ref[...] = jnp.maximum(o_ref[...], tile_max)   # cheap VPU combine

        if needs_seq_mask:
            is_last = s == pl.num_programs(2) - 1

            @pl.when(jnp.logical_not(is_last))
            def _full_tile():
                combine(x_ref[...])

            @pl.when(is_last)
            def _partial_tile():
                # Static slice of the valid prefix of the last (partial) seq
                # tile: stale VMEM in the padded tail is never read, and full
                # tiles never pay iota/where masking cost.
                combine(x_ref[:, :rem, :])
        else:
            combine(x_ref[...])

    return kernel


def _vmem_capacity_bytes():
    """Physical VMEM per TensorCore; conservative fallback if query fails."""
    try:
        info = pltpu.get_tpu_info()
        cap = int(getattr(info, "vmem_capacity_bytes", 0))
        if cap > 0:
            return cap
    except Exception:
        pass
    return 64 * 1024 * 1024  # v7x per-TC size: safe lower bound everywhere


def max_pooling(last_hidden_state, attention_mask=None, *, seq_tile=None):
    """Pallas equivalent of MaxPooling.forward.

    attention_mask is accepted for signature parity but unused — this exactly
    matches the PyTorch module, which ignores it.
    `seq_tile` optionally caps the sequence tile (used by tests to force the
    multi-tile + remainder-mask code paths at small shapes).
    """
    # The reference module ignores attention_mask, so padded positions
    # participate in the max (same as torch). A masked max would be easy to add.
    del attention_mask

    B, S, H = last_hidden_state.shape
    dtype = last_hidden_state.dtype
    itemsize = jnp.dtype(dtype).itemsize

    # Sublane packing for this dtype: 8 (f32), 16 (bf16), 32 (int8).
    pack = max(8, 32 // itemsize)

    # Batch tile: full batch if small (full-dim block is always legal),
    # otherwise one packing unit so the (TB, TH) output block tiles cleanly.
    TB = B if B <= pack else pack
    nb = pl.cdiv(B, TB)

    # Hidden split: if the batch axis has a single grid step, split H into two
    # lane-dense chunks so both v7x TensorCores each stream half the HBM
    # traffic. Neutral (serial) on single-TC chips.
    if nb == 1 and H >= 256 and H % 256 == 0:
        nh, TH = 2, H // 2
    else:
        nh, TH = 1, H
    # TODO(synk): if H is not a multiple of 128 the output stores are masked
    # (vst.msk); for such hidden sizes a wrapper-side lane-dense fold would help.

    # Generation-aware budget for the double-buffered input tile (~3/8 of
    # physical VMEM: ~48 MiB on 128 MiB chips, ~24 MiB on v7x's 64 MiB).
    vmem_capacity = _vmem_capacity_bytes()
    input_budget = (vmem_capacity * 3) // 8

    if seq_tile is not None:
        max_ts = int(seq_tile)
    else:
        max_ts = max(1, input_budget // (2 * TB * TH * itemsize))
    if max_ts >= S:
        TS = S                                   # full dim: always legal
    else:
        TS = max(pack, (max_ts // pack) * pack)

    ns = pl.cdiv(S, TS)
    needs_seq_mask = (S % TS) != 0

    # vmem_limit derived from the real footprint (double-buffered input block
    # + double-buffered output block) with headroom, capped below physical.
    footprint = 2 * TB * TS * TH * itemsize + 2 * TB * TH * itemsize
    vmem_limit = int(min(max(footprint + (4 << 20), 32 << 20),
                         vmem_capacity - (8 << 20)))

    kernel = _make_max_pool_kernel(TS, S, needs_seq_mask, dtype)

    return pl.pallas_call(
        kernel,
        out_shape=jax.ShapeDtypeStruct((B, H), dtype),
        grid=(nb, nh, ns),
        in_specs=[
            # (TB, TS, TH): TH lane-dense and last; TS is a multiple of the
            # sublane packing or the full seq dim.
            pl.BlockSpec((TB, TS, TH), lambda b, h, s: (b, s, h)),
        ],
        # Accumulator: same output block for every seq step of a (b, h) tile.
        out_specs=pl.BlockSpec((TB, TH), lambda b, h, s: (b, h)),
        compiler_params=pltpu.CompilerParams(
            # batch/hidden axes are independent (megacore-shardable); the seq
            # axis must stay arbitrary because the output accumulates across it.
            dimension_semantics=("parallel", "parallel", "arbitrary"),
            vmem_limit_bytes=vmem_limit,
        ),
        cost_estimate=pl.CostEstimate(
            flops=B * S * H,
            transcendentals=0,
            bytes_accessed=B * S * H * itemsize + B * H * itemsize,
        ),
    )(last_hidden_state)


if __name__ == "__main__":
    key = jax.random.PRNGKey(0)

    # --- Small demo shape consistent with the module's forward -------------
    B, S, H = 2, 8, 32  # batch, seq, hidden
    k1, _ = jax.random.split(key)
    last_hidden_state = jax.random.normal(k1, (B, S, H), dtype=jnp.float32)
    attention_mask = jnp.ones((B, S), dtype=jnp.int32)  # ignored by the module

    out = max_pooling(last_hidden_state, attention_mask)
    out = jax.block_until_ready(out)
    ref = jnp.max(last_hidden_state, axis=1)
    assert out.shape == (B, H)
    assert jnp.allclose(out, ref), "Pallas max-pool mismatch vs reference"

    # --- Partial batch tile (B % TB != 0) + bigger H ------------------------
    B2, S2, H2 = 12, 520, 256
    x2 = jax.random.normal(jax.random.PRNGKey(1), (B2, S2, H2), dtype=jnp.float32)
    out2 = jax.block_until_ready(max_pooling(x2))
    assert jnp.allclose(out2, jnp.max(x2, axis=1)), "partial-batch max-pool mismatch"

    # --- Forced small seq tile: multi-step reduction + partial last seq tile -
    out2b = jax.block_until_ready(max_pooling(x2, seq_tile=64))   # 520 % 64 != 0
    assert jnp.allclose(out2b, jnp.max(x2, axis=1)), "seq-remainder max-pool mismatch"

    # --- Small batch + H multiple of 256: exercises the H-split parallel axis
    B3, S3, H3 = 4, 256, 512
    x3 = jax.random.normal(jax.random.PRNGKey(2), (B3, S3, H3), dtype=jnp.float32)
    out3 = jax.block_until_ready(max_pooling(x3, seq_tile=128))
    assert jnp.allclose(out3, jnp.max(x3, axis=1)), "H-split max-pool mismatch"

    # --- bf16 path (max is exact in bf16) ------------------------------------
    x4 = jax.random.normal(jax.random.PRNGKey(3), (4, 64, 128)).astype(jnp.bfloat16)
    out4 = jax.block_until_ready(max_pooling(x4))
    assert jnp.allclose(out4.astype(jnp.float32),
                        jnp.max(x4, axis=1).astype(jnp.float32)), "bf16 max-pool mismatch"

    print("KERNEL_OK")
</pallas_src>

<mosaic_0001>
module attributes {stable_mosaic.version = 11 : i64} {
  func.func @kernel(%arg0: i32, %arg1: i32, %arg2: i32, %arg3: memref<2x8x32xf32, #tpu.memory_space<vmem>>, %arg4: memref<2x32xf32, #tpu.memory_space<vmem>>) attributes {dimension_semantics = [#tpu.dimension_semantics<parallel>, #tpu.dimension_semantics<parallel>, #tpu.dimension_semantics<arbitrary>], iteration_bounds = array<i64: 1, 1, 1>, scalar_prefetch = 0 : i64, scratch_operands = 0 : i64, tpu.core_type = #tpu.core_type<tc>, window_params = [{transform_indices = @transform_0, window_bounds = array<i64: 2, 8, 32>}, {transform_indices = @transform_1, window_bounds = array<i64: 2, 32>}]} {
    %c0_i32 = arith.constant 0 : i32
    %0 = arith.cmpi eq, %arg2, %c0_i32 : i32
    %1 = arith.extui %0 : i1 to i32
    %c0_i32_0 = arith.constant 0 : i32
    %2 = arith.cmpi ne, %1, %c0_i32_0 : i32
    scf.if %2 {
      %cst_7 = arith.constant 0xFF800000 : f32
      %8 = vector.broadcast %cst_7 : f32 to vector<2x32xf32>
      %c0_8 = arith.constant 0 : index
      %c0_9 = arith.constant 0 : index
      %9 = vector.load %arg4[%c0_8, %c0_9] : memref<2x32xf32, #tpu.memory_space<vmem>>, vector<2x32xf32>
      tpu.vector_store %arg4[%c0_8, %c0_9], %8 {strides = array<i32>} : memref<2x32xf32, #tpu.memory_space<vmem>>, vector<2x32xf32>,
    } else {
    }
    %c0 = arith.constant 0 : index
    %c0_1 = arith.constant 0 : index
    %c0_2 = arith.constant 0 : index
    %3 = vector.load %arg3[%c0, %c0_1, %c0_2] : memref<2x8x32xf32, #tpu.memory_space<vmem>>, vector<2x8x32xf32>
    %cst = arith.constant dense<0xFF800000> : vector<2x32xf32>
    %4 = vector.multi_reduction <maximumf>, %3, %cst [1] : vector<2x8x32xf32> to vector<2x32xf32>
    %c0_3 = arith.constant 0 : index
    %c0_4 = arith.constant 0 : index
    %5 = vector.load %arg4[%c0_3, %c0_4] : memref<2x32xf32, #tpu.memory_space<vmem>>, vector<2x32xf32>
    %6 = arith.maximumf %5, %4 : vector<2x32xf32>
    %c0_5 = arith.constant 0 : index
    %c0_6 = arith.constant 0 : index
    %7 = vector.load %arg4[%c0_5, %c0_6] : memref<2x32xf32, #tpu.memory_space<vmem>>, vector<2x32xf32>
    tpu.vector_store %arg4[%c0_5, %c0_6], %6 {strides = array<i32>} : memref<2x32xf32, #tpu.memory_space<vmem>>, vector<2x32xf32>,
    return
  }
  func.func @transform_0(%arg0: i32, %arg1: i32, %arg2: i32) -> (i32, i32, i32) {
    %c0_i32 = arith.constant 0 : i32
    return %arg0, %arg2, %arg1 : i32, i32, i32
  }
  func.func @transform_1(%arg0: i32, %arg1: i32, %arg2: i32) -> (i32, i32) {
    %c0_i32 = arith.constant 0 : i32
    return %arg0, %arg1 : i32, i32
  }
}

</mosaic_0001>

<bundles_post_ra>
// kernel: tpu_custom_call.1
= control target key start
LH: loop header
LB: loop body
LE: loop exit
PB: predicated region body
PF: predicated region fallthrough
CT: control target
= control target key end

     0   :  { %6 = vsyncpa [#allocation3], 0  ;;  %s164_s0 = inlined_call_operand.hbm [shape: f32[2,8,32], index: 0, kind: input, shape index: {}]   ;;  %s165_s1 = inlined_call_operand.hbm [shape: f32[2,32], index: 1, kind: output, shape index: {}]  }
   0x1   :  { %7 = vsyncpa [#allocation4], 0  ;;  %s123_s6 = smov [#allocation2]   ;;  %s75_s10 = scalar_lea.hbm %s164_s0, 256 }
   0x2   :  { %s13_s7 = sshll.u32 %s123_s6, 4  ;;  %p76_p0 = scmp.ne.s32.totalorder %s164_s0, %s75_s10  ;;  %s14_s7 = int_to_ptr.vmem [resolvable:$true] %s13_s7 }
   0x3   :  { %p79_p1 = scmp.lt.u32.totalorder %s75_s10, %s164_s0 }
   0x5   :  { %p81_p2 = pnand %p79_p1, %p76_p0 }
   0x7   :  { %84 = shalt.err (!%p81_p2)
}
   0x8   :  { %s85_s15 = scalar_lea.vmem %s14_s7, 256  ;;  %p90_p4 = scmp.lt.s32.totalorder %s14_s7, %s14_s7 }
   0x9   :  { %p86_p3 = scmp.ne.s32.totalorder %s14_s7, %s85_s15  ;;  %p91_p5 = scmp.lt.s32.totalorder %s85_s15, %s85_s15 }
   0xb   :  { %p92_p6 = por %p91_p5, %p90_p4 }
   0xd   :  { %p93_p7 = pnand %p92_p6, %p86_p3 }
   0xf   :  { %96 = shalt.err (!%p93_p7)
}
  0x10   :  { %s124_s16 = smov 128   ;;  %s125_s17 = smov 8  }
  0x11   :  { %19 = dma.hbm_to_vmem [thread:$0]  %s164_s0, 256, %s14_s7, [#allocation3], %s124_s16, %s124_s16, %s125_s17  }
  0x12   :  { %119 = dma.done.wait [#allocation3], 256  }
  0x13   :  { %120 = vsyncadd [#allocation3], 4294967040  ;;  %vm27_vm0 = vcmask 254976   ;;  %v126_v0 = vmov -inf   ;;  %vm31_vm1 = vcmask 261120   ;;  %v29_v1 = vld [vmem:[#allocation2] sm:$0xff] }
  0x14   :  { %28 = vst.msk [vmem:[#allocation5] sm:$0x3] %vm27_vm0, %v126_v0  ;;  %v30_v2 = vld [vmem:[#allocation2 + $0x8] sm:$0xff]  ;;  %v32_v3 = vsel %vm31_vm1, %v29_v1, -inf  ;;  %vm49_vm2 = vcmask 1041409   ;;  %s127_s0 = smov [#allocation5]  }
  0x15   :  { %v39_v4 = vsel %vm31_vm1, %v30_v2, -inf  ;;  %v33_v5 = vrot.slane %v32_v3, 4  ;;  %s61_s20 = sshll.u32 %s127_s0, 4  ;;  %s62_s20 = int_to_ptr.vmem [resolvable:$true] %s61_s20 }
  0x16   :  { %v40_v6 = vrot.slane %v39_v4, 4  ;;  %s97_s21 = scalar_lea.vmem %s62_s20, 32  ;;  %p102_p9 = scmp.lt.s32.totalorder %s62_s20, %s62_s20 }
  0x17   :  { %v34_v7 = vmax.f32 %v32_v3, %v33_v5  ;;  %p98_p8 = scmp.ne.s32.totalorder %s62_s20, %s97_s21  ;;  %p103_p10 = scmp.lt.s32.totalorder %s97_s21, %s97_s21 }
  0x18   :  { %v41_v8 = vmax.f32 %v39_v4, %v40_v6 }
  0x19   :  { %v35_v9 = vrot.slane %v34_v7, 2  ;;  %p104_p11 = por %p103_p10, %p102_p9 }
  0x1a   :  { %v42_v10 = vrot.slane %v41_v8, 2 }
  0x1b   :  { %v36_v11 = vmax.f32 %v34_v7, %v35_v9  ;;  %v46_v17 = vld [vmem:[#allocation5] sm:$0x3]  ;;  %p105_p12 = pnand %p104_p11, %p98_p8 }
  0x1c   :  { %v43_v12 = vmax.f32 %v41_v8, %v42_v10 }
  0x1d   :  { %v37_v13 = vrot.slane %v36_v11, 1 }
  0x1e   :  { %v44_v14 = vrot.slane %v43_v12, 1 }
  0x1f   :  { %v38_v15 = vmax.f32 %v36_v11, %v37_v13 }
  0x20   :  { %v45_v16 = vmax.f32 %v43_v12, %v44_v14 }
  0x22   :  { %v50_v18 = vsel %vm49_vm2, %v45_v16, %v38_v15 }
  0x23   :  { %v52_v19 = vmax.f32 %v46_v17, %v50_v18 }
  0x25   :  { %54 = vst.msk [vmem:[#allocation5] sm:$0x3] %vm27_vm0, %v52_v19 }
  0x26   :  { %108 = shalt.err (!%p105_p12)
}
  0x27   :  { %s109_s24 = scalar_lea.hbm %s165_s1, 32 }
  0x28   :  { %p110_p13 = scmp.ne.s32.totalorder %s165_s1, %s109_s24  ;;  %p113_p0 = scmp.lt.u32.totalorder %s109_s24, %s165_s1 }
  0x2a   :  { %p115_p1 = pnand %p113_p0, %p110_p13 }
  0x2c   :  { %118 = shalt.err (!%p115_p1)
}
  0x2d   :  { %64 = dma.vmem_to_hbm [thread:$0]  %s62_s20, 32, %s165_s1, [#allocation4]  }
  0x2e   :  { %121 = dma.done.wait [#allocation4], 32  }
  0x2f   :  { %122 = vsyncadd [#allocation4], 4294967264 }
  0x30   :  { %68 = vsyncpa [#allocation3], 1 }
  0x31   :  { %69 = vsyncpa [#allocation4], 1 }

</bundles_post_ra>
